<compile_context>
chip_gen: v6e
topology: v6e:2x2x1
jax: 0.10.0
libtpu: 0.0.40
codegen_flags: <defaults>
</compile_context>

<pallas_src>
import jax
import jax.numpy as jnp
from jax import lax
from jax.experimental import pallas as pl
from jax.experimental.pallas import tpu as pltpu

GROUP = 128          # ATOM group size (as in LinearInt4.__init__)
HALF = GROUP // 2    # packed bytes per int4 group


def _round_up(x, m):
    return ((x + m - 1) // m) * m


def _pick_o_tile(o_padded):
    for cand in (512, 256, 128):
        if o_padded % cand == 0:
            return cand
    return o_padded


def _group_tiling(num_groups):
    """(padded group count, groups per K tile); bounded so bkb stays 512-1024."""
    if num_groups <= 16:
        return num_groups, num_groups          # single K step; block dim == full dim
    gp = _round_up(num_groups, 8)
    bg = 16 if gp % 16 == 0 else 8
    return gp, bg


# ----------------------------------------------------------------------------
# Kernel 1: quantized GEMM  (== punica.ops.dense_layer_gemm_i4_fp16)
# ----------------------------------------------------------------------------
def _atom_gemm_kernel(a_ref, aout_ref, w4_ref, s4_ref, w8_ref, s8_ref,
                      out_ref, acc_ref):
    """One (o_tile, k_tile) grid step.

    a_ref    (bg, B, 128) f32   dequantized int4-group activations (nscale folded)
    aout_ref (B, 128)     f32   dequantized int8 outlier activations (oscale folded)
    w4_ref   (bg*64, bo)  uint8 packed int4 weights (K tile x O tile)
    s4_ref   (bg, bo)     f32   per-(group, out) weight scales
    w8_ref   (128, bo)    int8  int8 outlier weights
    s8_ref   (1, bo)      f32   per-out outlier weight scales
    out_ref  (B, bo)            output tile (written at last k step)
    acc_ref  (B, bo)      f32   persistent accumulator scratch
    """
    k = pl.program_id(1)

    # ---- k == 0: initialize the accumulator with the int8 outlier product.
    @pl.when(k == 0)
    def _():
        w8 = w8_ref[...].astype(jnp.float32)                       # exact
        p8 = jnp.dot(aout_ref[...], w8,
                     preferred_element_type=jnp.float32)           # (B, bo)
        acc_ref[...] = p8 * s8_ref[...]

    bg, bo = s4_ref.shape

    # ---- unpack int4 weights via arithmetic-shift sign extension; ONE convert
    # per nibble plane, NO per-element scale multiply on the weight plane.
    wp = w4_ref[...].astype(jnp.int32)                             # (bg*64, bo)
    w_lo = ((wp << 28) >> 28).astype(jnp.float32).reshape(bg, HALF, bo)
    w_hi = ((wp << 24) >> 28).astype(jnp.float32).reshape(bg, HALF, bo)

    # ---- per-group batched MXU contractions (K=64 per nibble plane), then
    # apply s4[g, o] to the f32 partials and reduce over groups.
    a = a_ref[...]                                                 # (bg, B, 128)
    dn = (((2,), (1,)), ((0,), (0,)))                              # batched matmul
    p = (lax.dot_general(a[:, :, :HALF], w_lo, dn,
                         preferred_element_type=jnp.float32) +
         lax.dot_general(a[:, :, HALF:], w_hi, dn,
                         preferred_element_type=jnp.float32))      # (bg, B, bo)
    acc_ref[...] += jnp.sum(p * s4_ref[...][:, None, :], axis=0)

    @pl.when(k == pl.num_programs(1) - 1)
    def _():
        out_ref[...] = acc_ref[...].astype(out_ref.dtype)


def atom_gemm(a_planes, a_out, params):
    """ATOM int4 + int8-outlier GEMM.

    a_planes (G, B, 128) f32  dequantized per-group activations (scales folded)
    a_out    (B, 128)    f32  dequantized outlier activations (scale folded)
    Returns (B, out_features) f32.
    """
    w4t, s4, w8t, s8 = params["w4t"], params["s4"], params["w8t"], params["s8"]
    G, B, _ = a_planes.shape
    gp, bg = params["Gp"], params["bg"]
    op, bo = params["Op"], params["bo"]
    out_features = params["out_features"]
    assert B % 8 == 0

    if gp != G:  # pad with zero groups (contribute nothing)
        a_planes = jnp.pad(a_planes, ((0, gp - G), (0, 0), (0, 0)))

    grid = (op // bo, gp // bg)

    out = pl.pallas_call(
        _atom_gemm_kernel,
        out_shape=jax.ShapeDtypeStruct((B, op), jnp.float32),
        grid_spec=pltpu.PrefetchScalarGridSpec(
            num_scalar_prefetch=0,
            grid=grid,
            in_specs=[
                pl.BlockSpec((bg, B, GROUP), lambda i, k: (k, 0, 0)),   # a_planes
                pl.BlockSpec((B, GROUP), lambda i, k: (0, 0)),          # a_out
                pl.BlockSpec((bg * HALF, bo), lambda i, k: (k, i)),     # w4t
                pl.BlockSpec((bg, bo), lambda i, k: (k, i)),            # s4
                pl.BlockSpec((GROUP, bo), lambda i, k: (0, i)),         # w8t
                pl.BlockSpec((1, bo), lambda i, k: (0, i)),             # s8
            ],
            out_specs=pl.BlockSpec((B, bo), lambda i, k: (0, i)),
            scratch_shapes=[pltpu.VMEM((B, bo), jnp.float32)],
        ),
        compiler_params=pltpu.CompilerParams(
            dimension_semantics=("parallel", "arbitrary"),
            vmem_limit_bytes=40 * 1024 * 1024,   # safe on v5e/v6e/v7x, >> usage
        ),
    )(a_planes, a_out, w4t, s4, w8t, s8)
    return out[:, :out_features] if op != out_features else out


# ----------------------------------------------------------------------------
# Kernel 2: SiLU(gate) * up, requantize (+ dequantize for the next GEMM)
#           (== punica.ops.activate_fp16_i4 followed by the GEMM's dequant)
# ----------------------------------------------------------------------------
def _activate_quant_kernel(gu_ref, hq_ref, hout_ref):
    """gu_ref (B, 2I) f32 = [gate | up]; outputs dequantized activations."""
    inter = gu_ref.shape[1] // 2
    B = gu_ref.shape[0]
    kn = inter - GROUP
    G = kn // GROUP

    gate = gu_ref[:, :inter]
    up = gu_ref[:, inter:]
    h = (gate * jax.nn.sigmoid(gate)) * up                      # f32, (B, I)

    # int8 outlier channels (last 128): quantize then immediately dequantize
    # (preserves the quantization precision loss, no packed storage needed).
    h_o = h[:, kn:]
    osc = jnp.maximum(jnp.max(jnp.abs(h_o), axis=1, keepdims=True) * (1.0 / 127.0),
                      1e-5)
    q8 = jnp.clip(jnp.round(h_o / osc), -127.0, 127.0)
    hout_ref[...] = q8 * osc

    # int4 channels, per-(token, 128-group) scale, all groups at once.
    hg = h[:, :kn].reshape(B, G, GROUP)                          # lane tiles kept
    s = jnp.maximum(jnp.max(jnp.abs(hg), axis=2, keepdims=True) * (1.0 / 7.0),
                    1e-5)
    q = jnp.clip(jnp.round(hg / s), -8.0, 7.0)
    hq_ref[...] = q * s                                          # (B, G, 128)


def activate_fp16_i4(gate_up, intermediate_size):
    """Fused SiLU(gate)*up + ATOM requant; returns GEMM-ready activation planes."""
    B = gate_up.shape[0]
    G = intermediate_size // GROUP - 1
    vmem = pl.BlockSpec(memory_space=pltpu.MemorySpace.VMEM)
    hq, h_out = pl.pallas_call(
        _activate_quant_kernel,
        out_shape=(jax.ShapeDtypeStruct((B, G, GROUP), jnp.float32),
                   jax.ShapeDtypeStruct((B, GROUP), jnp.float32)),
        in_specs=[vmem],
        out_specs=(vmem, vmem),
    )(gate_up)
    # (G, B, 128) plane layout for the GEMM; tiny plain-JAX transpose once/call.
    return jnp.transpose(hq, (1, 0, 2)), h_out


# ----------------------------------------------------------------------------
# Plain-JAX prologue: unpack the quantized module input once per call.
# (hoists the per-grid-step activation unpack / scale broadcast out of kernel 1)
# ----------------------------------------------------------------------------
def dequantize_input_fp16_i4(x):
    outlier, norms, outlier_scales, norm_scales = x
    B = norms.shape[0]
    G = norm_scales.shape[1]
    bp = _round_up(B, 8)

    n = norms.astype(jnp.int32)
    lo = ((n << 28) >> 28).astype(jnp.float32).reshape(B, G, HALF)
    hi = ((n << 24) >> 28).astype(jnp.float32).reshape(B, G, HALF)
    a = jnp.concatenate([lo, hi], axis=2) * norm_scales.astype(jnp.float32)[:, :, None]
    a_out = outlier.astype(jnp.float32) * outlier_scales.astype(jnp.float32)[:, None]

    if bp != B:
        a = jnp.pad(a, ((0, bp - B), (0, 0), (0, 0)))
        a_out = jnp.pad(a_out, ((0, bp - B), (0, 0)))
    return jnp.transpose(a, (1, 0, 2)), a_out, B       # (G, Bp, 128), (Bp, 128)


# ----------------------------------------------------------------------------
# Parameters & module
# ----------------------------------------------------------------------------
def _raw_linear_int4(key, in_features, out_features):
    assert in_features % GROUP == 0 and in_features > GROUP
    k1, k2, k3, k4 = jax.random.split(key, 4)
    G = in_features // GROUP - 1
    kb = (in_features - GROUP) // 2
    w4 = jax.random.randint(k1, (out_features, kb), 0, 256,
                            dtype=jnp.int32).astype(jnp.uint8)
    w8 = jax.random.randint(k2, (out_features, GROUP), -127, 128,
                            dtype=jnp.int32).astype(jnp.int8)
    s4 = jax.random.uniform(k3, (G, out_features), jnp.float32) * 0.01 + 0.005
    s8 = jax.random.uniform(k4, (1, out_features), jnp.float32) * 0.01 + 0.005
    # store weights pre-transposed (in, out): lane-dense MXU RHS on TPU.
    return dict(w4t=jnp.transpose(w4), s4=s4, w8t=jnp.transpose(w8), s8=s8)


def _concat_out(a, b):
    return {k: jnp.concatenate([a[k], b[k]], axis=-1) for k in a}


def _finalize_linear(params, in_features, out_features):
    """Pad K-groups / out-channels to the tiling grid and record tile sizes."""
    G = in_features // GROUP - 1
    gp, bg = _group_tiling(G)
    op = _round_up(out_features, 128)
    bo = _pick_o_tile(op)
    w4t, s4, w8t, s8 = params["w4t"], params["s4"], params["w8t"], params["s8"]
    if gp != G:
        w4t = jnp.pad(w4t, ((0, (gp - G) * HALF), (0, 0)))
        s4 = jnp.pad(s4, ((0, gp - G), (0, 0)))
    if op != out_features:
        pad_o = op - out_features
        w4t = jnp.pad(w4t, ((0, 0), (0, pad_o)))
        s4 = jnp.pad(s4, ((0, 0), (0, pad_o)))
        w8t = jnp.pad(w8t, ((0, 0), (0, pad_o)))
        s8 = jnp.pad(s8, ((0, 0), (0, pad_o)))
    return dict(w4t=w4t, s4=s4, w8t=w8t, s8=s8,
                Gp=gp, bg=bg, Op=op, bo=bo, out_features=out_features)


class LlamaMLPPallas:
    def __init__(self, hidden_size, intermediate_size, key):
        kg, ku, kd = jax.random.split(key, 3)
        self.hidden_size = hidden_size
        self.intermediate_size = intermediate_size
        gate = _raw_linear_int4(kg, hidden_size, intermediate_size)
        up = _raw_linear_int4(ku, hidden_size, intermediate_size)
        # fuse gate_proj and up_proj along the output-channel axis -> 1 GEMM.
        self.gate_up_proj = _finalize_linear(_concat_out(gate, up),
                                             hidden_size, 2 * intermediate_size)
        self.down_proj = _finalize_linear(
            _raw_linear_int4(kd, intermediate_size, hidden_size),
            intermediate_size, hidden_size)

    def __call__(self, x):
        # x = (outlier, norms, outlier_scales, norm_scales)
        a_planes, a_out, B = dequantize_input_fp16_i4(x)
        gu = atom_gemm(a_planes, a_out, self.gate_up_proj)         # (Bp, 2I) f32
        h_planes, h_out = activate_fp16_i4(gu, self.intermediate_size)
        out = atom_gemm(h_planes, h_out, self.down_proj)           # (Bp, H) f32
        return out[:B].astype(jnp.float16)


# ----------------------------------------------------------------------------
# Plain-JAX glue to build the quantized example input (mirrors the scheme)
# ----------------------------------------------------------------------------
def quantize_input_fp16_i4(h):
    B, F = h.shape
    h = h.astype(jnp.float32)
    G = F // GROUP - 1
    h_norm, h_out = h[:, :F - GROUP], h[:, F - GROUP:]
    oscale = jnp.maximum(jnp.max(jnp.abs(h_out), axis=1) / 127.0, 1e-5)
    out8 = jnp.clip(jnp.round(h_out / oscale[:, None]), -127, 127).astype(jnp.int8)
    hg = h_norm.reshape(B, G, GROUP)
    nscale = jnp.maximum(jnp.max(jnp.abs(hg), axis=2) / 7.0, 1e-5)
    q = jnp.clip(jnp.round(hg / nscale[:, :, None]), -8, 7).astype(jnp.int32)
    packed = (q[:, :, :HALF] & 0xF) | ((q[:, :, HALF:] & 0xF) << 4)
    norms = packed.reshape(B, (F - GROUP) // 2).astype(jnp.uint8)
    return out8, norms, oscale, nscale


if __name__ == "__main__":
    key = jax.random.PRNGKey(0)
    kx, kp = jax.random.split(key)

    batch, hidden_size, intermediate_size = 8, 256, 384

    x_fp = jax.random.normal(kx, (batch, hidden_size), jnp.float32)
    x = quantize_input_fp16_i4(x_fp)   # (outlier, norms, outlier_scales, norm_scales)

    mlp = LlamaMLPPallas(hidden_size, intermediate_size, kp)
    out = mlp(x)
    out = jax.block_until_ready(out)

    assert out.shape == (batch, hidden_size)
    assert out.dtype == jnp.float16
    assert bool(jnp.all(jnp.isfinite(out.astype(jnp.float32))))
    print("KERNEL_OK")
</pallas_src>

<mosaic_0001>
module attributes {stable_mosaic.version = 11 : i64} {
  func.func @_atom_gemm_kernel(%arg0: i32, %arg1: i32, %arg2: memref<1x8x128xf32, #tpu.memory_space<vmem>>, %arg3: memref<8x128xf32, #tpu.memory_space<vmem>>, %arg4: memref<64x256xi8, #tpu.memory_space<vmem>>, %arg5: memref<1x256xf32, #tpu.memory_space<vmem>>, %arg6: memref<128x256xi8, #tpu.memory_space<vmem>>, %arg7: memref<1x256xf32, #tpu.memory_space<vmem>>, %arg8: memref<8x256xf32, #tpu.memory_space<vmem>>, %arg9: memref<8x256xf32, #tpu.memory_space<vmem>>) attributes {dimension_semantics = [#tpu.dimension_semantics<parallel>, #tpu.dimension_semantics<arbitrary>], iteration_bounds = array<i64: 3, 1>, scalar_prefetch = 0 : i64, scratch_operands = 1 : i64, tpu.core_type = #tpu.core_type<tc>, window_params = [{transform_indices = @transform_0, window_bounds = array<i64: 1, 8, 128>}, {pipeline_mode = #tpu.pipeline_mode<synchronous>, transform_indices = @transform_1, window_bounds = array<i64: 8, 128>}, {transform_indices = @transform_2, window_bounds = array<i64: 64, 256>}, {transform_indices = @transform_3, window_bounds = array<i64: 1, 256>}, {transform_indices = @transform_4, window_bounds = array<i64: 128, 256>}, {transform_indices = @transform_5, window_bounds = array<i64: 1, 256>}, {transform_indices = @transform_6, window_bounds = array<i64: 8, 256>}]} {
    %c0_i32 = arith.constant 0 : i32
    %0 = arith.cmpi eq, %arg1, %c0_i32 : i32
    %1 = arith.extui %0 : i1 to i32
    %c0_i32_0 = arith.constant 0 : i32
    %2 = arith.cmpi ne, %1, %c0_i32_0 : i32
    scf.if %2 {
      %c0_17 = arith.constant 0 : index
      %c0_18 = arith.constant 0 : index
      %34 = vector.load %arg6[%c0_17, %c0_18] : memref<128x256xi8, #tpu.memory_space<vmem>>, vector<128x256xi8>
      %35 = arith.sitofp %34 : vector<128x256xi8> to vector<128x256xf32>
      %c0_19 = arith.constant 0 : index
      %c0_20 = arith.constant 0 : index
      %36 = vector.load %arg3[%c0_19, %c0_20] : memref<8x128xf32, #tpu.memory_space<vmem>>, vector<8x128xf32>
      %cst_21 = arith.constant dense<0.000000e+00> : vector<8x256xf32>
      %37 = tpu.matmul %36, %35, %cst_21 {dimension_numbers = #tpu.dot_dimension_numbers<[1], [0], [0], [1], [0, 0, 1, 1], [], []>} : vector<8x128xf32>, vector<128x256xf32>, vector<8x256xf32> -> vector<8x256xf32>
      %c0_22 = arith.constant 0 : index
      %c0_23 = arith.constant 0 : index
      %38 = vector.load %arg7[%c0_22, %c0_23] : memref<1x256xf32, #tpu.memory_space<vmem>>, vector<1x256xf32>
      %39 = vector.broadcast %38 : vector<1x256xf32> to vector<8x256xf32>
      %40 = arith.mulf %37, %39 : vector<8x256xf32>
      %c0_24 = arith.constant 0 : index
      %c0_25 = arith.constant 0 : index
      %41 = vector.load %arg9[%c0_24, %c0_25] : memref<8x256xf32, #tpu.memory_space<vmem>>, vector<8x256xf32>
      tpu.vector_store %arg9[%c0_24, %c0_25], %40 {strides = array<i32>} : memref<8x256xf32, #tpu.memory_space<vmem>>, vector<8x256xf32>,
    } else {
    }
    %c0 = arith.constant 0 : index
    %c0_1 = arith.constant 0 : index
    %3 = vector.load %arg4[%c0, %c0_1] : memref<64x256xi8, #tpu.memory_space<vmem>>, vector<64x256xi8>
    %4 = arith.extui %3 : vector<64x256xi8> to vector<64x256xi32>
    %c28_i32 = arith.constant 28 : i32
    %5 = vector.broadcast %c28_i32 : i32 to vector<64x256xi32>
    %6 = arith.shli %4, %5 : vector<64x256xi32>
    %c28_i32_2 = arith.constant 28 : i32
    %7 = vector.broadcast %c28_i32_2 : i32 to vector<64x256xi32>
    %8 = arith.shrsi %6, %7 : vector<64x256xi32>
    %9 = arith.sitofp %8 : vector<64x256xi32> to vector<64x256xf32>
    %10 = vector.shape_cast %9 : vector<64x256xf32> to vector<1x64x256xf32>
    %c24_i32 = arith.constant 24 : i32
    %11 = vector.broadcast %c24_i32 : i32 to vector<64x256xi32>
    %12 = arith.shli %4, %11 : vector<64x256xi32>
    %c28_i32_3 = arith.constant 28 : i32
    %13 = vector.broadcast %c28_i32_3 : i32 to vector<64x256xi32>
    %14 = arith.shrsi %12, %13 : vector<64x256xi32>
    %15 = arith.sitofp %14 : vector<64x256xi32> to vector<64x256xf32>
    %16 = vector.shape_cast %15 : vector<64x256xf32> to vector<1x64x256xf32>
    %c0_4 = arith.constant 0 : index
    %c0_5 = arith.constant 0 : index
    %c0_6 = arith.constant 0 : index
    %17 = vector.load %arg2[%c0_4, %c0_5, %c0_6] : memref<1x8x128xf32, #tpu.memory_space<vmem>>, vector<1x8x128xf32>
    %18 = vector.extract_strided_slice %17 {offsets = [0, 0, 0], sizes = [1, 8, 64], strides = [1, 1, 1]} : vector<1x8x128xf32> to vector<1x8x64xf32>
    %cst = arith.constant dense<0.000000e+00> : vector<1x8x256xf32>
    %19 = tpu.matmul %18, %10, %cst {dimension_numbers = #tpu.dot_dimension_numbers<[2], [1], [1], [2], [0, 0, 0, 1, 1, 2], [0], [0]>} : vector<1x8x64xf32>, vector<1x64x256xf32>, vector<1x8x256xf32> -> vector<1x8x256xf32>
    %20 = vector.extract_strided_slice %17 {offsets = [0, 0, 64], sizes = [1, 8, 64], strides = [1, 1, 1]} : vector<1x8x128xf32> to vector<1x8x64xf32>
    %cst_7 = arith.constant dense<0.000000e+00> : vector<1x8x256xf32>
    %21 = tpu.matmul %20, %16, %cst_7 {dimension_numbers = #tpu.dot_dimension_numbers<[2], [1], [1], [2], [0, 0, 0, 1, 1, 2], [0], [0]>} : vector<1x8x64xf32>, vector<1x64x256xf32>, vector<1x8x256xf32> -> vector<1x8x256xf32>
    %22 = arith.addf %19, %21 : vector<1x8x256xf32>
    %c0_8 = arith.constant 0 : index
    %c0_9 = arith.constant 0 : index
    %23 = vector.load %arg9[%c0_8, %c0_9] : memref<8x256xf32, #tpu.memory_space<vmem>>, vector<8x256xf32>
    %c0_10 = arith.constant 0 : index
    %c0_11 = arith.constant 0 : index
    %24 = vector.load %arg5[%c0_10, %c0_11] : memref<1x256xf32, #tpu.memory_space<vmem>>, vector<1x256xf32>
    %25 = vector.shape_cast %24 : vector<1x256xf32> to vector<1x1x256xf32>
    %26 = vector.broadcast %25 : vector<1x1x256xf32> to vector<1x8x256xf32>
    %27 = arith.mulf %22, %26 : vector<1x8x256xf32>
    %cst_12 = arith.constant dense<0.000000e+00> : vector<8x256xf32>
    %28 = vector.multi_reduction <add>, %27, %cst_12 [0] : vector<1x8x256xf32> to vector<8x256xf32>
    %29 = arith.addf %23, %28 : vector<8x256xf32>
    %c0_13 = arith.constant 0 : index
    %c0_14 = arith.constant 0 : index
    %30 = vector.load %arg9[%c0_13, %c0_14] : memref<8x256xf32, #tpu.memory_space<vmem>>, vector<8x256xf32>
    tpu.vector_store %arg9[%c0_13, %c0_14], %29 {strides = array<i32>} : memref<8x256xf32, #tpu.memory_space<vmem>>, vector<8x256xf32>,
    %c0_i32_15 = arith.constant 0 : i32
    %31 = arith.cmpi eq, %arg1, %c0_i32_15 : i32
    %32 = arith.extui %31 : i1 to i32
    %c0_i32_16 = arith.constant 0 : i32
    %33 = arith.cmpi ne, %32, %c0_i32_16 : i32
    scf.if %33 {
      %c0_17 = arith.constant 0 : index
      %c0_18 = arith.constant 0 : index
      %34 = vector.load %arg9[%c0_17, %c0_18] : memref<8x256xf32, #tpu.memory_space<vmem>>, vector<8x256xf32>
      %c0_19 = arith.constant 0 : index
      %c0_20 = arith.constant 0 : index
      %35 = vector.load %arg8[%c0_19, %c0_20] : memref<8x256xf32, #tpu.memory_space<vmem>>, vector<8x256xf32>
      tpu.vector_store %arg8[%c0_19, %c0_20], %34 {strides = array<i32>} : memref<8x256xf32, #tpu.memory_space<vmem>>, vector<8x256xf32>,
    } else {
    }
    return
  }
  func.func @transform_0(%arg0: i32, %arg1: i32) -> (i32, i32, i32) {
    %c0_i32 = arith.constant 0 : i32
    %c0_i32_0 = arith.constant 0 : i32
    %c0_i32_1 = arith.constant 0 : i32
    return %arg1, %c0_i32, %c0_i32_0 : i32, i32, i32
  }
  func.func @transform_1(%arg0: i32, %arg1: i32) -> (i32, i32) {
    %c0_i32 = arith.constant 0 : i32
    %c0_i32_0 = arith.constant 0 : i32
    %c0_i32_1 = arith.constant 0 : i32
    return %c0_i32, %c0_i32_0 : i32, i32
  }
  func.func @transform_2(%arg0: i32, %arg1: i32) -> (i32, i32) {
    %c0_i32 = arith.constant 0 : i32
    return %arg1, %arg0 : i32, i32
  }
  func.func @transform_3(%arg0: i32, %arg1: i32) -> (i32, i32) {
    %c0_i32 = arith.constant 0 : i32
    return %arg1, %arg0 : i32, i32
  }
  func.func @transform_4(%arg0: i32, %arg1: i32) -> (i32, i32) {
    %c0_i32 = arith.constant 0 : i32
    %c0_i32_0 = arith.constant 0 : i32
    return %c0_i32, %arg0 : i32, i32
  }
  func.func @transform_5(%arg0: i32, %arg1: i32) -> (i32, i32) {
    %c0_i32 = arith.constant 0 : i32
    %c0_i32_0 = arith.constant 0 : i32
    return %c0_i32, %arg0 : i32, i32
  }
  func.func @transform_6(%arg0: i32, %arg1: i32) -> (i32, i32) {
    %c0_i32 = arith.constant 0 : i32
    %c0_i32_0 = arith.constant 0 : i32
    return %c0_i32, %arg0 : i32, i32
  }
}

</mosaic_0001>

<bundles_post_ra>
// kernel: tpu_custom_call.1
= control target key start
LH: loop header
LB: loop body
LE: loop exit
PB: predicated region body
PF: predicated region fallthrough
CT: control target
= control target key end

     0   :  { %s1809_s0 = inlined_call_operand.hbm [shape: f32[1,8,128], index: 0, kind: input, shape index: {}]   ;;  %s1810_s1 = inlined_call_operand.hbm [shape: f32[8,128], index: 1, kind: input, shape index: {}]   ;;  %s1811_s2 = inlined_call_operand.hbm [shape: u8[64,768], index: 2, kind: input, shape index: {}]   ;;  %s1812_s3 = inlined_call_operand.hbm [shape: f32[1,768], index: 3, kind: input, shape index: {}]   ;;  %s1813_s4 = inlined_call_operand.hbm [shape: s8[128,768], index: 4, kind: input, shape index: {}]   ;;  %s1814_s5 = inlined_call_operand.vmem [shape: f32[1,768], index: 5, kind: input, shape index: {}]   ;;  %s1815_s6 = inlined_call_operand.hbm [shape: f32[8,768], index: 6, kind: output, shape index: {}]  }
   0x1   :  { %1828 = sst [smem:[#allocation22_spill]] %s1809_s0 }
   0x2   :  { %1829 = sst [smem:[#allocation23_spill]] %s1811_s2 }
   0x3   :  { %1830 = sst [smem:[#allocation24_spill]] %s1815_s6 }
   0x4   :  { %11 = vsyncpa [#allocation4], 0 }
   0x5   :  { %12 = vsyncpa [#allocation7], 0 }
   0x6   :  { %13 = vsyncpa [#allocation5], 0 }
   0x7   :  { %15 = vsyncpa [#allocation5 + $0x1], 0  ;;  %s1498_s21 = smov 0   ;;  %s1500_s22 = smov 0  }
   0x8   :  { %s1502_s23 = smov 0   ;;  %s1504_s24 = smov 0  }
   0x9   :  { %s1506_s25 = smov 0   ;;  %s1508_s26 = smov 0  }
   0xa LB: > { %1831 = sst [smem:[#allocation16_spill]] %s1430_s21  ;;  %s1529_s27 = sadd.s32 4294967295, %s1450_s26   ;;  %s1450_s26 = sphi %s1508_s26, %s21_s26   ;;  %s1446_s25 = sphi %s1506_s25, %s1865_s25   ;;  %s1442_s24 = sphi %s1504_s24, %s1864_s24   ;;  %s1438_s23 = sphi %s1502_s23, %s1860_s23   ;;  %s1434_s22 = sphi %s1500_s22, %s1863_s22   ;;  %s1430_s21 = sphi %s1498_s21, %s1862_s21  }
   0xb   : > { %1832 = sst [smem:[#allocation17_spill]] %s1438_s23  ;;  %s1063_s28 = sadd.s32 4294967294, %s1450_s26  }
   0xc   : > { %1833 = sst [smem:[#allocation18_spill]] %s1450_s26  ;;  %s33_s29 = sadd.s32 1, %s1446_s25 }
   0xd   : > { %s89_s30 = sadd.s32 1, %s1438_s23  ;;  %p35_p0 = scmp.ge.s32.totalorder %s33_s29, 3 }
   0xe   : > { %p96_p1 = scmp.ne.s32.totalorder %s1438_s23, %s1434_s22  ;;  %p97_p2 = scmp.eq.s32.totalorder %s1450_s26, 0 }
   0xf   : > { %p102_p3 = scmp.ne.s32.totalorder %s1434_s22, %s1430_s21  ;;  %s1867_s29 = smov (%p35_p0, %s33_s29), 0 }
  0x10   : > { %1834 = sst [smem:[#allocation19_spill]] %s1867_s29  ;;  %p1541_p4 = por %p97_p2, %p96_p1 }
  0x11   : > { %p1816_p5 = scmp.eq.s32.totalorder %s1529_s27, 0  ;;  %s85_s8 = ssub.s32 %s1446_s25, %s1867_s29 }
  0x12   : > { %p206_p6 = scmp.eq.s32.totalorder %s1529_s27, 2  ;;  %p87_p7 = scmp.eq.s32.totalorder %s85_s8, 0 }
  0x13   : > { %p1551_p8 = por %p1816_p5, %p102_p3  ;;  %p212_p10 = scmp.eq.s32.totalorder %s1063_s28, 2 }
  0x14   : > { %p1555_p9 = por %p206_p6, %p96_p1  ;;  %p1064_p12 = scmp.ge.s32.totalorder %s1450_s26, 1 }
  0x15   : > { %s1560_s11 = scalar_select %p87_p7, %s1438_s23, %s89_s30  }
  0x16   : > { %s1837_s10 = scalar_select %p1555_p9, 1, 0 }
  0x17   : > { %1838 = sst [smem:[#allocation20_spill]] %s1560_s11  ;;  %p1562_p11 = por %p212_p10, %p102_p3 }
  0x18   : > { %p219_p13 = scmp.lt.s32.totalorder %s1450_s26, 4  ;;  %s1452_s14 = smov [#allocation3]  }
  0x19   : > { %s1839_s12 = scalar_select %p1562_p11, 1, 0 }
  0x1a   : > { %p1568_p0 = pnand %p1064_p12, %p219_p13  ;;  %s234_s15 = sshll.u32 %s1452_s14, 4  ;;  %s235_s15 = int_to_ptr.vmem [resolvable:$true] %s234_s15 }
  0x1b   : > { %1840 = sst [smem:[#allocation21_spill]] %s1839_s12  ;;  %p1167_p1 = scmp.lt.s32.totalorder %s1450_s26, 3 }
  0x1c   : > { %p1144_p2 = pneg %p1568_p0  ;;  %s256_s16 = sand.u32 1, %s1450_s26  }
  0x1d   : > { %p1578_p6 = pnand %p1167_p1, %p1541_p4  ;;  %s1589_s19 = sand.u32 1, %s1438_s23  }
  0x1e   : > { %p1584_p3 = pnand %p1144_p2, %p1816_p5  ;;  %s1068_s20 = sshll.u32 %s1589_s19, 5 }
  0x1f   : > { %s1237_s28 = scalar_lea.vmem %s235_s15, 128  ;;  %p1245_p13 = scmp.lt.s32.totalorder %s235_s15, %s235_s15 }
  0x20   : > { %p1821_p7 = pneg %p1584_p3  ;;  %p1238_p10 = scmp.ne.s32.totalorder %s235_s15, %s1237_s28 }
  0x21   : > { %p1246_p1 = scmp.lt.s32.totalorder %s1237_s28, %s1237_s28 }
  0x22   : > { %p1240_p4 = pnand %p1238_p10, %p1821_p7 }
  0x23   : > { %p1247_p2 = por %p1246_p1, %p1245_p13 }
  0x24   : > { %p1241_p12 = pneg %p1240_p4 }
  0x26   : > { %p1248_p5 = pnand %p1247_p2, %p1241_p12 }
  0x28   : > { %1251 = shalt.err (!%p1248_p5)
}
  0x29   : > { %s1844_s0 = sld [smem:[#allocation22_spill]]  ;;  %s1822_s8 = sshll.u32 %s1446_s25, 8 }
  0x2a   : > { %s260_s14 = scalar_lea.vmem [#allocation8], %s1068_s20  ;;  %s1845_s2 = sld [smem:[#allocation23_spill]] }
  0x2b   : > { %s270_s29 = sshll.u32 %s260_s14, 4  ;;  %s1071_s12 = sshll.u32 %s1589_s19, 1  ;;  %s271_s29 = int_to_ptr.vmem [resolvable:$true] %s270_s29 }
  0x2c   : > { %s1609_s21 = scalar_lea.sflag [#allocation4], %s256_s16  ;;  %p1826_p5 = pneg %p1578_p6 }
  0x2d   : > { %s1265_s30 = scalar_lea.vmem %s271_s29, 512 }
  0x2e   : > { %p1266_p10 = scmp.ne.s32.totalorder %s271_s29, %s1265_s30 }
  0x2f   : > { %1147 = dma.hbm_to_vmem [thread:$0]  (!%p1584_p3), %s1844_s0, 128, %s235_s15, [#allocation4]  }
  0x30   : > { %s269_s23 = scalar_lea.hbm %s1845_s2, %s1822_s8  ;;  %p1268_p4 = pnand %p1266_p10, %p1826_p5 }
  0x31   : > { %s1453_s15 = smov [#allocation8]  }
  0x32   : > { %p1269_p12 = pneg %p1268_p4  ;;  %s1270_s20 = sshll.u32 %s1453_s15, 4  ;;  %s1271_s20 = int_to_ptr.vmem [resolvable:$false] %s1270_s20 }
  0x33   : > { %s1272_s7 = scalar_lea.vmem %s1271_s20, 1024  ;;  %p1273_p13 = scmp.lt.s32.totalorder %s271_s29, %s1271_s20 }
  0x34   : > { %p1274_p1 = scmp.lt.s32.totalorder %s1272_s7, %s1265_s30 }
  0x36   : > { %p1275_p2 = por %p1274_p1, %p1273_p13 }
  0x38   : > { %p1276_p7 = pnand %p1275_p2, %p1269_p12 }
  0x3a   : > { %1279 = shalt.err (!%p1276_p7)
}
  0x3b   : > { %s1454_s11 = smov 768   ;;  %s1455_s16 = smov 256  }
  0x3c   : > { %s1456_s14 = smov 16   ;;  %s1093_s28 = sshll.u32 %s1446_s25, 5 }
  0x3d   : > { %1154 = dma.hbm_to_vmem [thread:$0]  (!%p1578_p6), %s269_s23, 512, %s271_s29, %s1609_s21, %s1454_s11, %s1455_s16, %s1456_s14  }
  0x3e   : > { %s292_s30 = scalar_lea.hbm %s1812_s3, %s1093_s28  ;;  %s284_s20 = scalar_lea.vmem [#allocation9], %s1071_s12 }
  0x3f   : > { %s294_s7 = sshll.u32 %s284_s20, 4  ;;  %s1457_s2 = smov [#allocation9]   ;;  %s295_s7 = int_to_ptr.vmem [resolvable:$true] %s294_s7 }
  0x40   : > { %s1293_s0 = scalar_lea.vmem %s295_s7, 32  ;;  %s1298_s26 = sshll.u32 %s1457_s2, 4  ;;  %s1299_s26 = int_to_ptr.vmem [resolvable:$false] %s1298_s26 }
  0x41   : > { %p1294_p7 = scmp.ne.s32.totalorder %s295_s7, %s1293_s0  ;;  %s1300_s6 = scalar_lea.vmem %s1299_s26, 64 }
  0x42   : > { %p1301_p12 = scmp.lt.s32.totalorder %s295_s7, %s1299_s26  ;;  %p1302_p13 = scmp.lt.s32.totalorder %s1300_s6, %s1293_s0 }
  0x43   : > { %p1296_p10 = pnand %p1294_p7, %p1826_p5 }
  0x44   : > { %p1303_p1 = por %p1302_p13, %p1301_p12 }
  0x45   : > { %p1297_p4 = pneg %p1296_p10 }
  0x47   : > { %p1304_p2 = pnand %p1303_p1, %p1297_p4 }
  0x49   : > { %1307 = shalt.err (!%p1304_p2)
}
  0x4a   : > { %1157 = dma.hbm_to_vmem [thread:$0]  (!%p1578_p6), %s292_s30, 32, %s295_s7, %s1609_s21  }
  0x4b   : > { %s1458_s23 = smov [#allocation6]   ;;  %s1074_s12 = sshll.u32 %s1589_s19, 6 }
  0x4c   : > { %s245_s29 = sshll.u32 %s1458_s23, 4  ;;  %p1846_p10 = pneg %p1584_p3  ;;  %s246_s29 = int_to_ptr.vmem [resolvable:$true] %s245_s29 }
  0x4d   : > { %s1319_s8 = scalar_lea.vmem %s246_s29, 128  ;;  %p1327_p9 = scmp.lt.s32.totalorder %s246_s29, %s246_s29 }
  0x4e   : > { %p1320_p7 = scmp.ne.s32.totalorder %s246_s29, %s1319_s8  ;;  %p1328_p12 = scmp.lt.s32.totalorder %s1319_s8, %s1319_s8 }
  0x50   : > { %p1322_p5 = pnand %p1320_p7, %p1846_p10  ;;  %p1329_p4 = por %p1328_p12, %p1327_p9 }
  0x52   : > { %p1323_p11 = pneg %p1322_p5 }
  0x54   : > { %p1330_p13 = pnand %p1329_p4, %p1323_p11 }
  0x56   : > { %1333 = shalt.err (!%p1330_p13)
}
  0x57   : > { %1150 = dma.hbm_to_vmem [thread:$0]  (!%p1584_p3), %s1810_s1, 128, %s246_s29, [#allocation7]  }
  0x58   : > { %s1847_s6 = sshll.u32 %s1446_s25, 8  ;;  %s305_s15 = scalar_lea.vmem [#allocation10], %s1074_s12 }
  0x59   : > { %s311_s28 = scalar_lea.hbm %s1813_s4, %s1847_s6  ;;  %s312_s30 = sshll.u32 %s305_s15, 4  ;;  %s313_s30 = int_to_ptr.vmem [resolvable:$true] %s312_s30 }
  0x5a   : > { %s1347_s20 = scalar_lea.vmem %s313_s30, 1024  ;;  %p1848_p11 = pneg %p1578_p6 }
  0x5b   : > { %p1348_p9 = scmp.ne.s32.totalorder %s313_s30, %s1347_s20  ;;  %s1459_s18 = smov [#allocation10]  }
  0x5c   : > { %s1352_s7 = sshll.u32 %s1459_s18, 4  ;;  %s1353_s7 = int_to_ptr.vmem [resolvable:$false] %s1352_s7 }
  0x5d   : > { %p1350_p5 = pnand %p1348_p9, %p1848_p11  ;;  %s1354_s23 = scalar_lea.vmem %s1353_s7, 2048 }
  0x5e   : > { %p1355_p2 = scmp.lt.s32.totalorder %s313_s30, %s1353_s7  ;;  %p1356_p3 = scmp.lt.s32.totalorder %s1354_s23, %s1347_s20 }
  0x5f   : > { %p1351_p1 = pneg %p1350_p5 }
  0x60   : > { %p1357_p7 = por %p1356_p3, %p1355_p2 }
  0x62   : > { %p1358_p10 = pnand %p1357_p7, %p1351_p1 }
  0x64   : > { %1361 = shalt.err (!%p1358_p10)
}
  0x65   : > { %1160 = dma.hbm_to_vmem [thread:$0]  (!%p1578_p6), %s311_s28, 1024, %s313_s30, %s1609_s21, %s1454_s11, %s1455_s16, %s1456_s14  }
  0x66   : > { %332 = sbr.rel (%p1568_p0) target bundleno = 463 (0x1cf), region = 44  ;;  %p1849_p12 = scmp.eq.s32.totalorder (!%p1568_p0), %s1529_s27, 0 }
  0x6b   : > { %1413 = dma.done.wait (%p1849_p12), [#allocation4], 128   ;;  %p1850_p4 = pmov %p1849_p12 }
  0x6d   : > { %1415 = vsyncadd (%p1850_p4), [#allocation4], 4294967168  ;;  %p1851_p13 = pmov %p1850_p4 }
  0x6e   : > { %p1852_p9 = pmov %p1850_p4 }
  0x6f   : > { %1417 = dma.done.wait (%p1851_p13), [#allocation7], 128  }
  0x70   : > { %1419 = vsyncadd (%p1852_p9), [#allocation7], 4294967168  ;;  %s342_s17 = sand.u32 1, %s1529_s27   ;;  %s1667_s21 = sand.u32 1, %s1434_s22  }
  0x71   : > { %s1080_s13 = sshll.u32 %s1667_s21, 5  ;;  %s343_s11 = scalar_lea.sflag [#allocation4], %s342_s17 }
  0x72   : > { %s1670_s16 = scalar_lea.vmem [#allocation8], %s1080_s13 }
  0x73   : > { %1421 = dma.done.wait (%p1551_p8), %s343_s11, 1568  }
  0x74   : > { %1423 = vsyncadd (%p1551_p8), %s343_s11, 4294965728  ;;  %s1082_s14 = sshll.u32 %s1667_s21, 6  ;;  %v1460_v0 = vmov 0.0   ;;  %v1679_v1 = vld [vmem:[#allocation3] sm:$0xff]  ;;  %v584_v3 = vld [vmem:[%s1670_s16 + $0x18] sm:$0xff]  ;;  %s1461_s29 = smov 64  }
  0x75   : > { %784 = vmatprep.mubr.f32.mxu1 %v1460_v0  ;;  %558 = vmatprep.mubr.f32.mxu0 %v1460_v0  ;;  %s1681_s27 = scalar_lea.vmem [#allocation10], %s1082_s14  ;;  %v600_v6 = vunpack.c.3.s8 %v584_v3  ;;  %v583_v8 = vld [vmem:[%s1670_s16 + $0x10] sm:$0xff]  ;;  %v598_v9 = vunpack.c.2.s8 %v584_v3  ;;  %v596_v15 = vunpack.c.1.s8 %v584_v3  ;;  %v594_v20 = vunpack.c.0.s8 %v584_v3  ;;  %v582_v37 = vld [vmem:[%s1670_s16 + $0x8] sm:$0xff]  ;;  %v581_v43 = vld [vmem:[%s1670_s16] sm:$0xff]  ;;  %s1084_s9 = sshll.u32 %s1442_s24, 1 }
  0x76   : > { %v428_v2 = vld [vmem:[%s1681_s27 + $0x38] sm:$0xff]  ;;  %715 = vrot.lane.b32.xlu0 %v1679_v1, %s1461_s29  ;;  %v427_v7 = vld [vmem:[%s1681_s27 + $0x30] sm:$0xff]  ;;  %v599_v11 = vunpack.c.3.s8 %v583_v8  ;;  %v597_v12 = vunpack.c.2.s8 %v583_v8  ;;  %v595_v16 = vunpack.c.1.s8 %v583_v8  ;;  %v593_v28 = vunpack.c.0.s8 %v583_v8  ;;  %v426_v36 = vld [vmem:[%s1681_s27 + $0x28] sm:$0xff]  ;;  %p412_p8 = scmp.lt.s32.totalorder %s1084_s9, 5  ;;  %s1081_s12 = sshll.u32 %s1667_s21, 1 }
  0x77   : > { %v1096_v4 = vunpack.c.h.s8.bf16 %v428_v2  ;;  %v1100_v5 = vunpack.c.l.s8.bf16 %v428_v2  ;;  %v1098_v10 = vunpack.c.h.s8.bf16 %v427_v7  ;;  %v1688_v13 = vand.u32 255, %v600_v6  ;;  %v425_v42 = vld [vmem:[%s1681_s27 + $0x20] sm:$0xff]  ;;  %s355_s6 = scalar_lea.vmem [#allocation9], %s1081_s12  ;;  %s1083_s26 = sshll.u32 %s1667_s21, 4 }
  0x78   : > { %v1690_v14 = vand.u32 255, %v598_v9  ;;  %v1102_v17 = vunpack.c.l.s8.bf16 %v427_v7  ;;  %v1692_v18 = vand.u32 255, %v599_v11  ;;  %v1694_v19 = vand.u32 255, %v597_v12  ;;  %s1869_s9 = smov (!%p412_p8, %s1084_s9), 5  ;;  %s1095_s19 = sshll.u32 %s1442_s24, 8 }
  0x79   : > { %1097 = vmatprep.subr.bf16.mxu0 %v1096_v4  ;;  %v680_v21 = vshll.u32 %v1688_v13, 24  ;;  %v1698_v23 = vand.u32 255, %v596_v15  ;;  %v1700_v24 = vand.u32 255, %v595_v16  ;;  %v1704_v27 = vand.u32 255, %v594_v20  ;;  %s414_s2 = scalar_lea.vmem %s1814_s5, %s1869_s9  ;;  %s406_s28 = scalar_lea.vmem [#allocation11], %s1083_s26 }
  0x7a   : > { %1099 = vmatpush1.bf16.msra.mxu0 %v1098_v10  ;;  %v678_v22 = vshll.u32 %v1690_v14, 24  ;;  %v679_v25 = vshll.u32 %v1692_v18, 24  ;;  %v677_v26 = vshll.u32 %v1694_v19, 24  ;;  %v1713_v47 = vand.u32 255, %v593_v28  ;;  %s908_s15 = sshll.u32 %s406_s28, 4  ;;  %s1853_s18 = sld [smem:[#allocation24_spill]]  ;;  %s909_s15 = int_to_ptr.vmem [resolvable:$true] %s908_s15 }
  0x7b   : > { %1101 = vmatprep.subr.bf16.mxu0 %v1100_v5  ;;  %v696_v29 = vshra.s32 %v680_v21, 28  ;;  %v676_v31 = vshll.u32 %v1698_v23, 24  ;;  %v675_v32 = vshll.u32 %v1700_v24, 24  ;;  %v674_v35 = vshll.u32 %v1704_v27, 24  ;;  %s894_s23 = scalar_lea.sflag [#allocation5], %s1667_s21  ;;  %s1362_s17 = scalar_lea.vmem %s909_s15, 256 }
  0x7c   : > { %v694_v30 = vshra.s32 %v678_v22, 28  ;;  %v695_v33 = vshra.s32 %v679_v25, 28  ;;  %v693_v34 = vshra.s32 %v677_v26, 28  ;;  %v1104_v50 = vunpack.c.h.s8.bf16 %v426_v36  ;;  %v424_v22 = vld [vmem:[%s1681_s27 + $0x18] sm:$0xff]  ;;  %p1363_p0 = scmp.ne.s32.totalorder %s909_s15, %s1362_s17  ;;  %p1854_p6 = scmp.ne.s32.totalorder %s1837_s10, 0 }
  0x7d   : > { %v712_v38 = vcvt.s32.f32 %v696_v29  ;;  %v692_v40 = vshra.s32 %v676_v31, 28  ;;  %v691_v41 = vshra.s32 %v675_v32, 28  ;;  %v690_v46 = vshra.s32 %v674_v35, 28  ;;  %s1462_s24 = smov [#allocation11]  }
  0x7e   : > { %1103 = vmatpush1.bf16.msra.mxu0 %v1102_v17  ;;  %v710_v39 = vcvt.s32.f32 %v694_v30  ;;  %v711_v44 = vcvt.s32.f32 %v695_v33  ;;  %v709_v45 = vcvt.s32.f32 %v693_v34  ;;  %v592_v51 = vunpack.c.3.s8 %v582_v37  ;;  %v423_v34 = vld [vmem:[%s1681_s27 + $0x10] sm:$0xff]  ;;  %p1364_p11 = pnand %p1363_p0, %p1854_p6  ;;  %s1366_s13 = sshll.u32 %s1462_s24, 4  ;;  %s1367_s13 = int_to_ptr.vmem [resolvable:$false] %s1366_s13 }
  0x7f   : > { %736 = vmatprep.subr.mxu1 %v712_v38  ;;  %v708_v48 = vcvt.s32.f32 %v692_v40  ;;  %v707_v49 = vcvt.s32.f32 %v691_v41  ;;  %v706_v52 = vcvt.s32.f32 %v690_v46  ;;  %v673_v53 = vshll.u32 %v1713_v47, 24  ;;  %1105 = vmatprep.subr.bf16.mxu0 %v1104_v50  ;;  %s1368_s11 = scalar_lea.vmem %s1367_s13, 512  ;;  %p1369_p1 = scmp.lt.s32.totalorder %s909_s15, %s1367_s13 }
  0x80   : > { %737 = vmatpush1.msra.mxu1 %v711_v44  ;;  %v1106_v54 = vunpack.c.h.s8.bf16 %v425_v42  ;;  %v591_v55 = vunpack.c.3.s8 %v581_v43  ;;  %v1716_v56 = vand.u32 255, %v592_v51  ;;  %v590_v57 = vunpack.c.2.s8 %v582_v37  ;;  %v422_v51 = vld [vmem:[%s1681_s27 + $0x8] sm:$0xff]  ;;  %s906_s7 = scalar_lea.hbm %s1853_s18, %s1095_s19  ;;  %p1365_p5 = pneg %p1364_p11 }
  0x81   : > { %738 = vmatprep.subr.mxu1 %v710_v39  ;;  %v589_v58 = vunpack.c.2.s8 %v581_v43  ;;  %v1108_v59 = vunpack.c.l.s8.bf16 %v426_v36  ;;  %v689_v60 = vshra.s32 %v673_v53, 28  ;;  %v588_v62 = vunpack.c.1.s8 %v582_v37  ;;  %p1370_p2 = scmp.lt.s32.totalorder %s1368_s11, %s1362_s17 }
  0x82   : > { %739 = vmatpush1.msra.mxu1 %v709_v45  ;;  %1107 = vmatpush1.bf16.msra.mxu0 %v1106_v54  ;;  %v1718_v61 = vand.u32 255, %v591_v55  ;;  %v1110_v63 = vunpack.c.l.s8.bf16 %v425_v42  ;;  %v672_v2 = vshll.u32 %v1716_v56, 24  ;;  %v1721_v3 = vand.u32 255, %v590_v57  ;;  %v421_v54 = vld [vmem:[%s1681_s27] sm:$0xff] }
  0x83   : > { %740 = vmatprep.subr.mxu1 %v708_v48  ;;  %v1723_v4 = vand.u32 255, %v589_v58  ;;  %1109 = vmatprep.subr.bf16.mxu0 %v1108_v59  ;;  %v587_v5 = vunpack.c.1.s8 %v581_v43  ;;  %v705_v6 = vcvt.s32.f32 %v689_v60  ;;  %v1726_v8 = vand.u32 255, %v588_v62  ;;  %v493_v59 = vld [vmem:[#allocation6] sm:$0xff]  ;;  %p1371_p3 = por %p1370_p2, %p1369_p1 }
  0x84   : > { %741 = vmatpush1.msra.mxu1 %v707_v49  ;;  %v671_v7 = vshll.u32 %v1718_v61, 24  ;;  %v586_v9 = vunpack.c.0.s8 %v582_v37  ;;  %v688_v10 = vshra.s32 %v672_v2, 28  ;;  %v670_v11 = vshll.u32 %v1721_v3, 24 }
  0x85   : > { %742 = vmatprep.subr.mxu1 %v706_v52  ;;  %v669_v12 = vshll.u32 %v1723_v4, 24  ;;  %v1730_v15 = vand.u32 255, %v587_v5  ;;  %v668_v17 = vshll.u32 %v1726_v8, 24  ;;  %v585_v21 = vunpack.c.0.s8 %v581_v43  ;;  %p1372_p7 = pnand %p1371_p3, %p1365_p5 }
  0x86   : > { %743 = vmatpush1.msra.mxu1 %v705_v6  ;;  %v687_v16 = vshra.s32 %v671_v7, 28  ;;  %1111 = vmatpush1.bf16.msra.mxu0 %v1110_v63  ;;  %v1733_v20 = vand.u32 255, %v586_v9  ;;  %v704_v25 = vcvt.s32.f32 %v688_v10  ;;  %v686_v26 = vshra.s32 %v670_v11, 28 }
  0x87   : > { %v685_v28 = vshra.s32 %v669_v12, 28  ;;  %v667_v29 = vshll.u32 %v1730_v15, 24  ;;  %v684_v31 = vshra.s32 %v668_v17, 28  ;;  %v1738_v33 = vand.u32 255, %v585_v21 }
  0x88   : > { %v703_v30 = vcvt.s32.f32 %v687_v16  ;;  %v666_v32 = vshll.u32 %v1733_v20, 24  ;;  %744 = vmatprep.subr.mxu1 %v704_v25  ;;  %v702_v35 = vcvt.s32.f32 %v686_v26  ;;  %v1112_v38 = vunpack.c.h.s8.bf16 %v424_v22 }
  0x89   : > { %v701_v36 = vcvt.s32.f32 %v685_v28  ;;  %v683_v37 = vshra.s32 %v667_v29, 28  ;;  %v700_v39 = vcvt.s32.f32 %v684_v31  ;;  %v665_v41 = vshll.u32 %v1738_v33, 24 }
  0x8a   : > { %745 = vmatpush1.msra.mxu1 %v703_v30  ;;  %v682_v40 = vshra.s32 %v666_v32, 28  ;;  %v632_v42 = vshll.u32 %v1688_v13, 28  ;;  %1113 = vmatprep.subr.bf16.mxu0 %v1112_v38  ;;  %v1114_v44 = vunpack.c.h.s8.bf16 %v423_v34  ;;  %v1116_v49 = vunpack.c.l.s8.bf16 %v424_v22 }
  0x8b   : > { %746 = vmatprep.subr.mxu1 %v702_v35  ;;  %v699_v43 = vcvt.s32.f32 %v683_v37  ;;  %v681_v46 = vshra.s32 %v665_v41, 28  ;;  %v1118_v50 = vunpack.c.l.s8.bf16 %v423_v34  ;;  %v1120_v13 = vunpack.c.h.s8.bf16 %v422_v51 }
  0x8c   : > { %747 = vmatpush1.msra.mxu1 %v701_v36  ;;  %v698_v45 = vcvt.s32.f32 %v682_v40  ;;  %v648_v48 = vshra.s32 %v632_v42, 28  ;;  %1115 = vmatpush1.bf16.msra.mxu0 %v1114_v44  ;;  %v1122_v55 = vunpack.c.h.s8.bf16 %v421_v54  ;;  %v1124_v57 = vunpack.c.l.s8.bf16 %v422_v51 }
  0x8d   : > { %748 = vmatprep.subr.mxu1 %v700_v39  ;;  %v697_v52 = vcvt.s32.f32 %v681_v46  ;;  %1117 = vmatprep.subr.bf16.mxu0 %v1116_v49  ;;  %v1126_v58 = vunpack.c.l.s8.bf16 %v421_v54  ;;  %v631_v60 = vshll.u32 %v1692_v18, 28  ;;  %v630_v62 = vshll.u32 %v1690_v14, 28  ;;  %v565_v46 = vld [vmem:[%s414_s2] sm:$0x3] }
  0x8e   : > { %749 = vmatpush1.msra.mxu1 %v699_v43  ;;  %v664_v53 = vcvt.s32.f32 %v648_v48  ;;  %v629_v63 = vshll.u32 %v1694_v19, 28  ;;  %v628_v2 = vshll.u32 %v1698_v23, 28  ;;  %v627_v6 = vshll.u32 %v1700_v24, 28  ;;  %v866_v48 = vld [vmem:[%s355_s6] sm:$0x3] }
  0x8f   : > { %750 = vmatprep.subr.mxu1 %v698_v45  ;;  %v647_v5 = vshra.s32 %v631_v60, 28  ;;  %v646_v7 = vshra.s32 %v630_v62, 28  ;;  %v626_v9 = vshll.u32 %v1704_v27, 28  ;;  %v625_v11 = vshll.u32 %v1713_v47, 28 }
  0x90   : > { %751 = vmatpush1.msra.mxu1 %v697_v52  ;;  %1119 = vmatpush1.bf16.msra.mxu0 %v1118_v50  ;;  %v645_v10 = vshra.s32 %v629_v63, 28  ;;  %v644_v12 = vshra.s32 %v628_v2, 28  ;;  %v624_v16 = vshll.u32 %v1716_v56, 28  ;;  %vm717_vm0 = vcmask 523264  }
  0x91   : > { %809 = vmatprep.subr.mxu1 %v664_v53  ;;  %1121 = vmatprep.subr.bf16.mxu0 %v1120_v13  ;;  %v663_v18 = vcvt.s32.f32 %v647_v5  ;;  %v643_v17 = vshra.s32 %v627_v6, 28  ;;  %v623_v14 = vshll.u32 %v1718_v61, 28  ;;  %v662_v19 = vcvt.s32.f32 %v646_v7 }
  0x92   : > { %v642_v21 = vshra.s32 %v626_v9, 28  ;;  %v622_v23 = vshll.u32 %v1721_v3, 28  ;;  %v661_v24 = vcvt.s32.f32 %v645_v10  ;;  %v641_v25 = vshra.s32 %v625_v11, 28 }
  0x93   : > { %v621_v27 = vshll.u32 %v1723_v4, 28  ;;  %v660_v47 = vcvt.s32.f32 %v644_v12  ;;  %v640_v26 = vshra.s32 %v624_v16, 28  ;;  %v620_v56 = vshll.u32 %v1726_v8, 28 }
  0x94   : > { %1123 = vmatpush1.bf16.msra.mxu0 %v1122_v55  ;;  %v659_v28 = vcvt.s32.f32 %v643_v17  ;;  %v639_v29 = vshra.s32 %v623_v14, 28  ;;  %v619_v61 = vshll.u32 %v1730_v15, 28  ;;  %v658_v3 = vcvt.s32.f32 %v642_v21 }
  0x95   : > { %1125 = vmatprep.subr.bf16.mxu0 %v1124_v57  ;;  %v638_v30 = vshra.s32 %v622_v23, 28  ;;  %v618_v31 = vshll.u32 %v1733_v20, 28  ;;  %v657_v4 = vcvt.s32.f32 %v641_v25  ;;  %v637_v32 = vshra.s32 %v621_v27, 28 }
  0x96   : > { %v617_v34 = vshll.u32 %v1738_v33, 28  ;;  %v656_v35 = vcvt.s32.f32 %v640_v26  ;;  %v636_v8 = vshra.s32 %v620_v56, 28  ;;  %v655_v36 = vcvt.s32.f32 %v639_v29 }
  0x97   : > { %v635_v37 = vshra.s32 %v619_v61, 28  ;;  %v654_v15 = vcvt.s32.f32 %v638_v30  ;;  %v634_v38 = vshra.s32 %v618_v31, 28  ;;  %v567_v42 = vlaneseq }
  0x98   : > { %1127 = vmatpush1.bf16.msra.mxu0 %v1126_v58  ;;  %v633_v39 = vshra.s32 %v617_v34, 28  ;;  %v652_v20 = vcvt.s32.f32 %v636_v8 }
  0x99   : > { %v651_v40 = vcvt.s32.f32 %v635_v37  ;;  %v650_v33 = vcvt.s32.f32 %v634_v38  ;;  %v568_v43 = vshrl.u32 %v567_v42, 7 }
  0x9a   : > { %v649_v41 = vcvt.s32.f32 %v633_v39 }
  0x9b   : > { %559 = vmatmul.mubr.f32.vlgmr.msra.gmra.mxu0 %v493_v59  ;;  %v569_v44 = vsub.s32 0, %v568_v43  ;;  %v573_v50 = vsub.s32 1, %v568_v43 }
  0x9d   : > { %v570_v49 = vrot.slane %v565_v46, %v569_v44  ;;  %v871_v52 = vrot.slane %v866_v48, %v569_v44  ;;  %v574_v55 = vrot.slane %v565_v46, %v573_v50  ;;  %v875_v57 = vrot.slane %v866_v48, %v573_v50 }
  0xe8   : > { %v716_v22 = vpop.permute.xlu0 %715 }
  0xe9   : > { %1085 = vmatmul.mubr.msk.f32.vlgmr.msra.gmra.mxu1 %vm717_vm0, %v716_v22 }
  0xea   : > { %810 = vmatpush1.msra.mxu1 %v663_v18  ;;  %857 = vmatprep.mubr.f32.mxu1 %v1460_v0  ;;  %v653_v0 = vcvt.s32.f32 %v637_v32 }
  0xeb   : > { %811 = vmatprep.subr.mxu1 %v662_v19 }
  0xec   : > { %812 = vmatpush1.msra.mxu1 %v661_v24 }
  0xed   : > { %813 = vmatprep.subr.mxu1 %v660_v47 }
  0xee   : > { %814 = vmatpush1.msra.mxu1 %v659_v28 }
  0xef   : > { %815 = vmatprep.subr.mxu1 %v658_v3 }
  0xf0   : > { %816 = vmatpush1.msra.mxu1 %v657_v4 }
  0xf1   : > { %817 = vmatprep.subr.mxu1 %v656_v35 }
  0xf2   : > { %818 = vmatpush1.msra.mxu1 %v655_v36 }
  0xf3   : > { %819 = vmatprep.subr.mxu1 %v654_v15 }
  0xf4   : > { %820 = vmatpush1.msra.mxu1 %v653_v0 }
  0xf5   : > { %821 = vmatprep.subr.mxu1 %v652_v20 }
  0xf6   : > { %822 = vmatpush1.msra.mxu1 %v651_v40 }
  0xf7   : > { %823 = vmatprep.subr.mxu1 %v650_v33 }
  0xf8   : > { %824 = vmatpush1.msra.mxu1 %v649_v41 }
  0xf9   : > { %1086 = vmatmul.mubr.msk.f32.vlgmr.msra.gmra.mxu1 %vm717_vm0, %v1679_v1 }
 0x15b   : > { %v560_v51 = vpop.f32.mrf.mxu0 }
 0x15c   : > { %v577_v54 = vmul.f32 %v570_v49, %v560_v51 }
 0x15d   : > { %v562_v58 = vpop.f32.mrf.mxu0 }
 0x15e   : > { %v578_v2 = vmul.f32 %v574_v55, %v562_v58 }
 0x1a9   : > { %v786_v45 = vpop.f32.mrf.mxu1 }
 0x1ab   : > { %v788_v1 = vpop.f32.mrf.mxu1 }
 0x1b9   : > { %v859_v53 = vpop.f32.mrf.mxu1 }
 0x1ba   : > { %v860_v13 = vadd.f32 %v859_v53, %v786_v45 }
 0x1bb   : > { %v861_v59 = vpop.f32.mrf.mxu1 }
 0x1bc   : > { %v878_v60 = vmul.f32 %v871_v52, %v860_v13  ;;  %v862_v62 = vadd.f32 %v861_v59, %v788_v1 }
 0x1be   : > { %v882_v63 = vadd.f32 %v878_v60, %v577_v54  ;;  %v879_v5 = vmul.f32 %v875_v57, %v862_v62 }
 0x1c0   : > { %v883_v6 = vadd.f32 %v879_v5, %v578_v2  ;;  %891 = vst [vmem:[%s406_s28] sm:$0xff] %v882_v63 }
 0x1c2   : > { %892 = vst [vmem:[%s406_s28 + $0x8] sm:$0xff] %v883_v6 }
 0x1c3   : > { %1375 = shalt.err (!%p1372_p7)
}
 0x1c4   : > { %s1376_s16 = scalar_lea.hbm %s906_s7, 256  ;;  %s1380_s27 = scalar_lea.hbm %s1853_s18, 768 }
 0x1c5   : > { %p1377_p10 = scmp.ne.s32.totalorder %s906_s7, %s1376_s16  ;;  %p1381_p13 = scmp.lt.s32.totalorder %s906_s7, %s1853_s18 }
 0x1c6   : > { %p1382_p9 = scmp.lt.s32.totalorder %s1380_s27, %s1376_s16 }
 0x1c7   : > { %p1378_p12 = pnand %p1377_p10, %p1854_p6 }
 0x1c8   : > { %p1383_p8 = por %p1382_p9, %p1381_p13 }
 0x1c9   : > { %p1379_p4 = pneg %p1378_p12 }
 0x1cb   : > { %p1384_p0 = pnand %p1383_p8, %p1379_p4 }
 0x1cd   : > { %1387 = shalt.err (!%p1384_p0)
}
 0x1ce   : > { %1142 = dma.vmem_to_hbm [thread:$0]  (%p1854_p6), %s909_s15, 256, %s906_s7, %s894_s23  }
 0x1cf PF: > { %s1855_s12 = sld [smem:[#allocation18_spill]] }
 0x1d0   : > { %s1856_s8 = sld [smem:[#allocation16_spill]] }
 0x1d1   : > { %s1857_s0 = sld [smem:[#allocation21_spill]] }
 0x1d5   : > { %p1170_p11 = scmp.ge.s32.totalorder %s1855_s12, 2 }
 0x1d6   : > { %s920_s2 = sand.u32 1, %s1856_s8  }
 0x1d7   : > { %p1858_p5 = scmp.ne.s32.totalorder %s1857_s0, 0  ;;  %s921_s6 = scalar_lea.sflag [#allocation5], %s920_s2 }
 0x1d9   : > { %p1162_p1 = pnand %p1170_p11, %p1858_p5 }
 0x1db   : > { %p1163_p2 = pneg %p1162_p1 }
 0x1dd   : > { %1425 = dma.done.wait (%p1163_p2), %s921_s6, 256  }
 0x1de   : > { %1427 = vsyncadd (%p1163_p2), %s921_s6, 4294967040  ;;  %s21_s26 = sadd.s32 1, %s1855_s12   ;;  %s1859_s19 = sld [smem:[#allocation17_spill]] }
 0x1df   : > { %p18_p3 = scmp.ge.s32.totalorder %s21_s26, 5   ;;  %s1860_s23 = sld [smem:[#allocation20_spill]] }
 0x1e0   : > { %s1861_s10 = sld [smem:[#allocation19_spill]]  ;;  %s1862_s21 = smov %s1434_s22 }
 0x1e1   : > { %s1864_s24 = smov %s1446_s25 }
 0x1e2   :  { %20 = sbr.rel (!%p18_p3) target bundleno = 10 (0xa), region = 130 }
 0x1e4   : > { %s1863_s22 = smov %s1859_s19 }
 0x1e6   : > { %s1865_s25 = smov %s1861_s10 }
 0x1e7   :  { %926 = vsyncpa [#allocation4], 1 }
 0x1e8   :  { %928 = vsyncpa [#allocation4 + $0x1], 1 }
 0x1e9   :  { %929 = vsyncpa [#allocation7], 1 }
 0x1ea   :  { %930 = vsyncpa [#allocation5], 1 }
 0x1eb   :  { %932 = vsyncpa [#allocation5 + $0x1], 1 }

</bundles_post_ra>
